<compile_context>
chip_gen: v6e
topology: v6e:2x2x1
jax: 0.10.0
libtpu: 0.0.40
codegen_flags: <defaults>
</compile_context>

<pallas_src>
import functools

import jax
import jax.numpy as jnp
import numpy as np
from jax.experimental import pallas as pl
from jax.experimental.pallas import tpu as pltpu


def _round_up(x, m):
    return ((x + m - 1) // m) * m


def _mlp_kernel(x_ref,
                w1_ref, b1_ref,
                w2_ref, b2_ref,
                w3_ref, b3_ref,
                w4_ref, b4_ref,
                o_ref):
    """Fused forward for one batch tile: 4 MXU matmuls (f32 accumulation) +
    bias add + ReLU on the VPU. Weights stay resident in VMEM across tiles."""
    mm = w1_ref.dtype  # f32, or bf16 when weights are stored as bf16

    h = jnp.dot(x_ref[...].astype(mm), w1_ref[...],
                preferred_element_type=jnp.float32)
    h = jnp.maximum(h + b1_ref[...], 0.0)

    h = jnp.dot(h.astype(mm), w2_ref[...], preferred_element_type=jnp.float32)
    h = jnp.maximum(h + b2_ref[...], 0.0)

    h = jnp.dot(h.astype(mm), w3_ref[...], preferred_element_type=jnp.float32)
    h = jnp.maximum(h + b3_ref[...], 0.0)

    h = jnp.dot(h.astype(mm), w4_ref[...], preferred_element_type=jnp.float32)
    o_ref[...] = (h + b4_ref[...]).astype(o_ref.dtype)


def init_params(key, input_size, num_labels, *, matmul_dtype=jnp.float32):
    """PyTorch nn.Linear-style init; weights stored transposed ([in, out]) at
    their TRUE sizes (no padding). Biases stay f32, shape [1, out]."""
    sizes = [(input_size, 128), (128, 64), (64, 64), (64, num_labels)]
    params = {}
    for i, (fi, fo) in enumerate(sizes, 1):
        key, kw, kb = jax.random.split(key, 3)
        bound = 1.0 / float(np.sqrt(fi))
        w = jax.random.uniform(kw, (fi, fo), jnp.float32, -bound, bound)
        b = jax.random.uniform(kb, (1, fo), jnp.float32, -bound, bound)
        params[f"w{i}"] = w.astype(matmul_dtype)
        params[f"b{i}"] = b  # f32 bias / epilogue
    return params


@functools.partial(jax.jit, static_argnames=("tm",))
def perceptron_nn_forward(x, params, *, tm=4096):
    """x: [B, input_size] float32. Returns [B, num_labels] float32."""
    B, f_in = x.shape
    num_labels = params["w4"].shape[1]

    # Batch tiling: even tiles, each a multiple of 8 sublanes, and at least 2
    # grid steps when the batch allows it (v7x megacore needs >=2 to shard).
    tm = max(int(tm), 8)
    B8 = _round_up(max(B, 8), 8)
    n_steps = max(pl.cdiv(B8, tm), 2 if B8 >= 16 else 1)
    TM = _round_up(pl.cdiv(B8, n_steps), 8)
    B_pad = TM * n_steps
    if B_pad != B:
        # Small row-pad only (<= ~8 rows per tile); padded rows are sliced off.
        x = jnp.pad(x, ((0, B_pad - B), (0, 0)))

    w_args = (
        params["w1"], params["b1"],
        params["w2"], params["b2"],
        params["w3"], params["b3"],
        params["w4"], params["b4"],
    )
    # Whole-array blocks with a constant index_map -> fetched once, resident.
    weight_specs = [pl.BlockSpec(w.shape, lambda i: (0, 0)) for w in w_args]

    flops = 2 * B_pad * (f_in * 128 + 128 * 64 + 64 * 64 + 64 * num_labels)
    bytes_accessed = (
        B_pad * f_in * x.dtype.itemsize
        + B_pad * num_labels * 4
        + sum(int(w.size) * w.dtype.itemsize for w in w_args)
    )

    out = pl.pallas_call(
        _mlp_kernel,
        out_shape=jax.ShapeDtypeStruct((B_pad, num_labels), jnp.float32),
        grid=(n_steps,),
        in_specs=[pl.BlockSpec((TM, f_in), lambda i: (i, 0))] + weight_specs,
        out_specs=pl.BlockSpec((TM, num_labels), lambda i: (i, 0)),
        compiler_params=pltpu.CompilerParams(
            dimension_semantics=("parallel",),
            vmem_limit_bytes=48 * 1024 * 1024),
        cost_estimate=pl.CostEstimate(
            flops=flops, transcendentals=0, bytes_accessed=bytes_accessed),
    )(x, *w_args)

    return out if B_pad == B else out[:B]


def reference_forward(x, params):
    """Pure-JAX reference (f32 math on the stored weights)."""
    f32 = jnp.float32
    h = jnp.maximum(x @ params["w1"].astype(f32) + params["b1"], 0.0)
    h = jnp.maximum(h @ params["w2"].astype(f32) + params["b2"], 0.0)
    h = jnp.maximum(h @ params["w3"].astype(f32) + params["b3"], 0.0)
    return h @ params["w4"].astype(f32) + params["b4"]


if __name__ == "__main__":
    input_size = 39   # from the module's training config (inpsize39)
    num_labels = 10
    batch = 100       # bs100 from the config; ragged-vs-tile handled by padding

    key = jax.random.PRNGKey(0)
    key, kx = jax.random.split(key)
    x = jax.random.normal(kx, (batch, input_size), jnp.float32)

    # f32 path: exact PyTorch semantics, tight check.
    params_f32 = init_params(key, input_size, num_labels)
    out = jax.block_until_ready(perceptron_nn_forward(x, params_f32))
    ref = reference_forward(x, params_f32)
    assert out.shape == (batch, num_labels)
    assert jnp.allclose(out, ref, atol=1e-4, rtol=1e-4), (
        float(jnp.max(jnp.abs(out - ref))))

    # bf16-operand path (f32 accumulation): the fast path for v5e/v6e;
    # tolerance is looser by design (bf16 rounding of activations).
    params_bf16 = init_params(key, input_size, num_labels,
                              matmul_dtype=jnp.bfloat16)
    out_bf = jax.block_until_ready(perceptron_nn_forward(x, params_bf16))
    ref_bf = reference_forward(x, params_bf16)
    assert out_bf.shape == (batch, num_labels)
    assert jnp.allclose(out_bf, ref_bf, atol=1e-1, rtol=1e-1), (
        float(jnp.max(jnp.abs(out_bf - ref_bf))))

    print("KERNEL_OK")
</pallas_src>

<mosaic_0001>
module attributes {stable_mosaic.version = 11 : i64} {
  func.func @_mlp_kernel(%arg0: i32, %arg1: memref<56x39xf32, #tpu.memory_space<vmem>>, %arg2: memref<39x128xf32, #tpu.memory_space<vmem>>, %arg3: memref<1x128xf32, #tpu.memory_space<vmem>>, %arg4: memref<128x64xf32, #tpu.memory_space<vmem>>, %arg5: memref<1x64xf32, #tpu.memory_space<vmem>>, %arg6: memref<64x64xf32, #tpu.memory_space<vmem>>, %arg7: memref<1x64xf32, #tpu.memory_space<vmem>>, %arg8: memref<64x10xf32, #tpu.memory_space<vmem>>, %arg9: memref<1x10xf32, #tpu.memory_space<vmem>>, %arg10: memref<56x10xf32, #tpu.memory_space<vmem>>) attributes {dimension_semantics = [#tpu.dimension_semantics<parallel>], iteration_bounds = array<i64: 2>, scalar_prefetch = 0 : i64, scratch_operands = 0 : i64, tpu.core_type = #tpu.core_type<tc>, window_params = [{transform_indices = @transform_0, window_bounds = array<i64: 56, 39>}, {pipeline_mode = #tpu.pipeline_mode<synchronous>, transform_indices = @transform_1, window_bounds = array<i64: 39, 128>}, {pipeline_mode = #tpu.pipeline_mode<synchronous>, transform_indices = @transform_2, window_bounds = array<i64: 1, 128>}, {pipeline_mode = #tpu.pipeline_mode<synchronous>, transform_indices = @transform_3, window_bounds = array<i64: 128, 64>}, {pipeline_mode = #tpu.pipeline_mode<synchronous>, transform_indices = @transform_4, window_bounds = array<i64: 1, 64>}, {pipeline_mode = #tpu.pipeline_mode<synchronous>, transform_indices = @transform_5, window_bounds = array<i64: 64, 64>}, {pipeline_mode = #tpu.pipeline_mode<synchronous>, transform_indices = @transform_6, window_bounds = array<i64: 1, 64>}, {pipeline_mode = #tpu.pipeline_mode<synchronous>, transform_indices = @transform_7, window_bounds = array<i64: 64, 10>}, {pipeline_mode = #tpu.pipeline_mode<synchronous>, transform_indices = @transform_8, window_bounds = array<i64: 1, 10>}, {transform_indices = @transform_9, window_bounds = array<i64: 56, 10>}]} {
    %c0 = arith.constant 0 : index
    %c0_0 = arith.constant 0 : index
    %0 = vector.load %arg1[%c0, %c0_0] : memref<56x39xf32, #tpu.memory_space<vmem>>, vector<56x39xf32>
    %c0_1 = arith.constant 0 : index
    %c0_2 = arith.constant 0 : index
    %1 = vector.load %arg2[%c0_1, %c0_2] : memref<39x128xf32, #tpu.memory_space<vmem>>, vector<39x128xf32>
    %cst = arith.constant dense<0.000000e+00> : vector<56x128xf32>
    %2 = tpu.matmul %0, %1, %cst {dimension_numbers = #tpu.dot_dimension_numbers<[1], [0], [0], [1], [0, 0, 1, 1], [], []>} : vector<56x39xf32>, vector<39x128xf32>, vector<56x128xf32> -> vector<56x128xf32>
    %c0_3 = arith.constant 0 : index
    %c0_4 = arith.constant 0 : index
    %3 = vector.load %arg3[%c0_3, %c0_4] : memref<1x128xf32, #tpu.memory_space<vmem>>, vector<1x128xf32>
    %4 = vector.broadcast %3 : vector<1x128xf32> to vector<56x128xf32>
    %5 = arith.addf %2, %4 : vector<56x128xf32>
    %cst_5 = arith.constant 0.000000e+00 : f32
    %6 = vector.broadcast %cst_5 : f32 to vector<56x128xf32>
    %7 = arith.maximumf %5, %6 : vector<56x128xf32>
    %c0_6 = arith.constant 0 : index
    %c0_7 = arith.constant 0 : index
    %8 = vector.load %arg4[%c0_6, %c0_7] : memref<128x64xf32, #tpu.memory_space<vmem>>, vector<128x64xf32>
    %cst_8 = arith.constant dense<0.000000e+00> : vector<56x64xf32>
    %9 = tpu.matmul %7, %8, %cst_8 {dimension_numbers = #tpu.dot_dimension_numbers<[1], [0], [0], [1], [0, 0, 1, 1], [], []>} : vector<56x128xf32>, vector<128x64xf32>, vector<56x64xf32> -> vector<56x64xf32>
    %c0_9 = arith.constant 0 : index
    %c0_10 = arith.constant 0 : index
    %10 = vector.load %arg5[%c0_9, %c0_10] : memref<1x64xf32, #tpu.memory_space<vmem>>, vector<1x64xf32>
    %11 = vector.broadcast %10 : vector<1x64xf32> to vector<56x64xf32>
    %12 = arith.addf %9, %11 : vector<56x64xf32>
    %cst_11 = arith.constant 0.000000e+00 : f32
    %13 = vector.broadcast %cst_11 : f32 to vector<56x64xf32>
    %14 = arith.maximumf %12, %13 : vector<56x64xf32>
    %c0_12 = arith.constant 0 : index
    %c0_13 = arith.constant 0 : index
    %15 = vector.load %arg6[%c0_12, %c0_13] : memref<64x64xf32, #tpu.memory_space<vmem>>, vector<64x64xf32>
    %cst_14 = arith.constant dense<0.000000e+00> : vector<56x64xf32>
    %16 = tpu.matmul %14, %15, %cst_14 {dimension_numbers = #tpu.dot_dimension_numbers<[1], [0], [0], [1], [0, 0, 1, 1], [], []>} : vector<56x64xf32>, vector<64x64xf32>, vector<56x64xf32> -> vector<56x64xf32>
    %c0_15 = arith.constant 0 : index
    %c0_16 = arith.constant 0 : index
    %17 = vector.load %arg7[%c0_15, %c0_16] : memref<1x64xf32, #tpu.memory_space<vmem>>, vector<1x64xf32>
    %18 = vector.broadcast %17 : vector<1x64xf32> to vector<56x64xf32>
    %19 = arith.addf %16, %18 : vector<56x64xf32>
    %cst_17 = arith.constant 0.000000e+00 : f32
    %20 = vector.broadcast %cst_17 : f32 to vector<56x64xf32>
    %21 = arith.maximumf %19, %20 : vector<56x64xf32>
    %c0_18 = arith.constant 0 : index
    %c0_19 = arith.constant 0 : index
    %22 = vector.load %arg8[%c0_18, %c0_19] : memref<64x10xf32, #tpu.memory_space<vmem>>, vector<64x10xf32>
    %cst_20 = arith.constant dense<0.000000e+00> : vector<56x10xf32>
    %23 = tpu.matmul %21, %22, %cst_20 {dimension_numbers = #tpu.dot_dimension_numbers<[1], [0], [0], [1], [0, 0, 1, 1], [], []>} : vector<56x64xf32>, vector<64x10xf32>, vector<56x10xf32> -> vector<56x10xf32>
    %c0_21 = arith.constant 0 : index
    %c0_22 = arith.constant 0 : index
    %24 = vector.load %arg9[%c0_21, %c0_22] : memref<1x10xf32, #tpu.memory_space<vmem>>, vector<1x10xf32>
    %25 = vector.broadcast %24 : vector<1x10xf32> to vector<56x10xf32>
    %26 = arith.addf %23, %25 : vector<56x10xf32>
    %c0_23 = arith.constant 0 : index
    %c0_24 = arith.constant 0 : index
    %27 = vector.load %arg10[%c0_23, %c0_24] : memref<56x10xf32, #tpu.memory_space<vmem>>, vector<56x10xf32>
    tpu.vector_store %arg10[%c0_23, %c0_24], %26 {strides = array<i32>} : memref<56x10xf32, #tpu.memory_space<vmem>>, vector<56x10xf32>,
    return
  }
  func.func @transform_0(%arg0: i32) -> (i32, i32) {
    %c0_i32 = arith.constant 0 : i32
    %c0_i32_0 = arith.constant 0 : i32
    return %arg0, %c0_i32 : i32, i32
  }
  func.func @transform_1(%arg0: i32) -> (i32, i32) {
    %c0_i32 = arith.constant 0 : i32
    %c0_i32_0 = arith.constant 0 : i32
    %c0_i32_1 = arith.constant 0 : i32
    return %c0_i32, %c0_i32_0 : i32, i32
  }
  func.func @transform_2(%arg0: i32) -> (i32, i32) {
    %c0_i32 = arith.constant 0 : i32
    %c0_i32_0 = arith.constant 0 : i32
    %c0_i32_1 = arith.constant 0 : i32
    return %c0_i32, %c0_i32_0 : i32, i32
  }
  func.func @transform_3(%arg0: i32) -> (i32, i32) {
    %c0_i32 = arith.constant 0 : i32
    %c0_i32_0 = arith.constant 0 : i32
    %c0_i32_1 = arith.constant 0 : i32
    return %c0_i32, %c0_i32_0 : i32, i32
  }
  func.func @transform_4(%arg0: i32) -> (i32, i32) {
    %c0_i32 = arith.constant 0 : i32
    %c0_i32_0 = arith.constant 0 : i32
    %c0_i32_1 = arith.constant 0 : i32
    return %c0_i32, %c0_i32_0 : i32, i32
  }
  func.func @transform_5(%arg0: i32) -> (i32, i32) {
    %c0_i32 = arith.constant 0 : i32
    %c0_i32_0 = arith.constant 0 : i32
    %c0_i32_1 = arith.constant 0 : i32
    return %c0_i32, %c0_i32_0 : i32, i32
  }
  func.func @transform_6(%arg0: i32) -> (i32, i32) {
    %c0_i32 = arith.constant 0 : i32
    %c0_i32_0 = arith.constant 0 : i32
    %c0_i32_1 = arith.constant 0 : i32
    return %c0_i32, %c0_i32_0 : i32, i32
  }
  func.func @transform_7(%arg0: i32) -> (i32, i32) {
    %c0_i32 = arith.constant 0 : i32
    %c0_i32_0 = arith.constant 0 : i32
    %c0_i32_1 = arith.constant 0 : i32
    return %c0_i32, %c0_i32_0 : i32, i32
  }
  func.func @transform_8(%arg0: i32) -> (i32, i32) {
    %c0_i32 = arith.constant 0 : i32
    %c0_i32_0 = arith.constant 0 : i32
    %c0_i32_1 = arith.constant 0 : i32
    return %c0_i32, %c0_i32_0 : i32, i32
  }
  func.func @transform_9(%arg0: i32) -> (i32, i32) {
    %c0_i32 = arith.constant 0 : i32
    %c0_i32_0 = arith.constant 0 : i32
    return %arg0, %c0_i32 : i32, i32
  }
}

</mosaic_0001>

<bundles_post_ra>
// kernel: perceptron_nn_forward.1
= control target key start
LH: loop header
LB: loop body
LE: loop exit
PB: predicated region body
PF: predicated region fallthrough
CT: control target
= control target key end

     0   :  { %s1306_s30 = smov 0   ;;  %s1591_s0 = inlined_call_operand.vmem [shape: f32[112,39], index: 0, kind: input, shape index: {}]   ;;  %s1592_s1 = inlined_call_operand.vmem [shape: f32[39,128], index: 1, kind: input, shape index: {}]   ;;  %s1593_s2 = inlined_call_operand.vmem [shape: f32[1,128], index: 2, kind: input, shape index: {}]   ;;  %s1594_s3 = inlined_call_operand.vmem [shape: f32[128,64], index: 3, kind: input, shape index: {}]   ;;  %s1595_s4 = inlined_call_operand.vmem [shape: f32[1,64], index: 4, kind: input, shape index: {}]   ;;  %s1596_s5 = inlined_call_operand.vmem [shape: f32[64,64], index: 5, kind: input, shape index: {}]   ;;  %s1597_s6 = inlined_call_operand.vmem [shape: f32[1,64], index: 6, kind: input, shape index: {}]   ;;  %s1598_s7 = inlined_call_operand.vmem [shape: f32[64,10], index: 7, kind: input, shape index: {}]   ;;  %s1599_s8 = inlined_call_operand.vmem [shape: f32[1,10], index: 8, kind: input, shape index: {}]   ;;  %s1600_s9 = inlined_call_operand.vmem [shape: f32[112,10], index: 9, kind: output, shape index: {}]  }
   0x1 LB: > { %s962_s10 = sadd.s32 4294967295, %s1252_s30   ;;  %p966_p0 = scmp.ge.s32.totalorder %s1252_s30, 1  ;;  %s1252_s30 = sphi %s1306_s30, %s19_s30  }
   0x2   : > { %p288_p1 = scmp.lt.s32.totalorder %s1252_s30, 3 }
   0x4   : > { %p289_p2 = pnand %p966_p0, %p288_p1 }
   0x5   : > { %s324_s15 = smul.u32 (!%p289_p2), 7, %s962_s10 }
   0x6   : > { %292 = sbr.rel (%p289_p2) target bundleno = 833 (0x341), region = 56 }
   0x7   : > { %p325_p3 = scmp.lt.s32.totalorder (!%p289_p2), %s324_s15, 13 }
   0xb   : > { %v347_v0 = vld [vmem:[%s1592_s1 + $0x20] sm:$0x7f]  ;;  %vm377_vm0 = vcmask 1046528   ;;  %v1254_v1 = vmov 0.0   ;;  %v346_v2 = vld [vmem:[%s1592_s1 + $0x18] sm:$0xff]  ;;  %vm1255_vm1 = vmmov 0  }
   0xc   : > { %1062 = vmatprep.subr.mxu0 %v1254_v1  ;;  %1093 = vmatprep.subr.mxu1 %v1254_v1  ;;  %v503_v3 = vld [vmem:[%s1594_s3 + $0x78] sm:$0xff]  ;;  %v502_v4 = vld [vmem:[%s1594_s3 + $0x70] sm:$0xff]  ;;  %v501_v6 = vld [vmem:[%s1594_s3 + $0x68] sm:$0xff]  ;;  %s1602_s15 = smov (!%p325_p3, %s324_s15), 13  ;;  %vm355_vm2 = vcmask 318464   ;;  %vm633_vm3 = vcmask 523264  }
   0xd   : > { %1063 = vmatpush3.msk.msra.mxu0 %vm377_vm0, %v347_v0  ;;  %1072 = vmatprep.mubr.msk.f32.mxu0 %vm1255_vm1, %v1254_v1  ;;  %v345_v5 = vld [vmem:[%s1592_s1 + $0x10] sm:$0xff]  ;;  %v344_v7 = vld [vmem:[%s1592_s1 + $0x8] sm:$0xff]  ;;  %v500_v8 = vld [vmem:[%s1594_s3 + $0x60] sm:$0xff]  ;;  %s967_s10 = sshll.u32 %s1602_s15, 3  ;;  %vm898_vm4 = vcmask 80896  }
   0xe   : > { %1064 = vmatprep.subr.mxu0 %v1254_v1  ;;  %1094 = vmatpush3.msra.mxu1 %v503_v3  ;;  %v343_v9 = vld [vmem:[%s1592_s1] sm:$0xff]  ;;  %s1358_s13 = scalar_lea.vmem %s1591_s0, %s967_s10  ;;  %v499_v10 = vld [vmem:[%s1594_s3 + $0x58] sm:$0xff]  ;;  %v498_v12 = vld [vmem:[%s1594_s3 + $0x50] sm:$0xff]  ;;  %s334_s27 = scalar_lea.vmem %s1600_s9, %s967_s10 }
   0xf   : > { %1065 = vmatpush3.msra.mxu0 %v346_v2  ;;  %1095 = vmatprep.subr.mxu1 %v1254_v1  ;;  %v336_v11 = vld [vmem:[%s1358_s13] sm:$0xff]  ;;  %v337_v13 = vld [vmem:[%s1358_s13 + $0x8] sm:$0xff]  ;;  %v338_v16 = vld [vmem:[%s1358_s13 + $0x10] sm:$0xff] }
  0x10   : > { %1066 = vmatprep.subr.mxu0 %v1254_v1  ;;  %1096 = vmatpush3.msra.mxu1 %v502_v4  ;;  %v497_v14 = vld [vmem:[%s1594_s3 + $0x48] sm:$0xff]  ;;  %v496_v15 = vld [vmem:[%s1594_s3 + $0x40] sm:$0xff]  ;;  %v495_v17 = vld [vmem:[%s1594_s3 + $0x38] sm:$0xff] }
  0x11   : > { %1067 = vmatpush3.msra.mxu0 %v345_v5  ;;  %1097 = vmatprep.subr.mxu1 %v1254_v1  ;;  %v494_v18 = vld [vmem:[%s1594_s3 + $0x30] sm:$0xff]  ;;  %v339_v19 = vld [vmem:[%s1358_s13 + $0x18] sm:$0xff]  ;;  %v493_v20 = vld [vmem:[%s1594_s3 + $0x28] sm:$0xff] }
  0x12   : > { %1068 = vmatprep.subr.mxu0 %v1254_v1  ;;  %1098 = vmatpush3.msra.mxu1 %v501_v6  ;;  %v492_v21 = vld [vmem:[%s1594_s3 + $0x20] sm:$0xff]  ;;  %v491_v23 = vld [vmem:[%s1594_s3 + $0x18] sm:$0xff]  ;;  %v341_v24 = vld [vmem:[%s1358_s13 + $0x28] sm:$0xff] }
  0x13   : > { %1069 = vmatpush3.msra.mxu0 %v344_v7  ;;  %1099 = vmatprep.subr.mxu1 %v1254_v1  ;;  %v340_v22 = vld [vmem:[%s1358_s13 + $0x20] sm:$0xff]  ;;  %v342_v25 = vld [vmem:[%s1358_s13 + $0x30] sm:$0xff]  ;;  %v489_v27 = vld [vmem:[%s1594_s3 + $0x8] sm:$0xff] }
  0x14   : > { %1070 = vmatprep.subr.mxu0 %v1254_v1  ;;  %1100 = vmatpush3.msra.mxu1 %v500_v8  ;;  %v490_v26 = vld [vmem:[%s1594_s3 + $0x10] sm:$0xff]  ;;  %v488_v28 = vld [vmem:[%s1594_s3] sm:$0xff]  ;;  %v625_v29 = vld [vmem:[%s1596_s5 + $0x38] sm:$0xff] }
  0x15   : > { %1071 = vmatpush3.msra.mxu0 %v343_v9  ;;  %1101 = vmatprep.subr.mxu1 %v1254_v1  ;;  %v624_v30 = vld [vmem:[%s1596_s5 + $0x30] sm:$0xff]  ;;  %v623_v31 = vld [vmem:[%s1596_s5 + $0x28] sm:$0xff]  ;;  %v622_v32 = vld [vmem:[%s1596_s5 + $0x20] sm:$0xff] }
  0x16   : > { %1073 = vmatmul.mubr.msk.f32.vlgmr.msra.gmra.mxu0 %vm355_vm2, %v336_v11  ;;  %1102 = vmatpush3.msra.mxu1 %v499_v10  ;;  %v621_v33 = vld [vmem:[%s1596_s5 + $0x18] sm:$0xff]  ;;  %v620_v34 = vld [vmem:[%s1596_s5 + $0x10] sm:$0xff]  ;;  %v619_v35 = vld [vmem:[%s1596_s5 + $0x8] sm:$0xff] }
  0x17   : > { %1075 = vmatprep.mubr.msk.f32.mxu0 %vm1255_vm1, %v1254_v1  ;;  %1103 = vmatprep.subr.mxu1 %v1254_v1  ;;  %v969_v36 = vld [vmem:[%s1593_s2] ss:$0 sm:$0xff]  ;;  %v769_v3 = vld [vmem:[%s1598_s7 + $0x38] sm:$0xff]  ;;  %v768_v4 = vld [vmem:[%s1598_s7 + $0x30] sm:$0xff] }
  0x18   : > { %1104 = vmatpush3.msra.mxu1 %v498_v12  ;;  %1125 = vmatprep.mubr.msk.f32.mxu1 %vm1255_vm1, %v1254_v1  ;;  %v618_v2 = vld [vmem:[%s1596_s5] sm:$0xff]  ;;  %v767_v5 = vld [vmem:[%s1598_s7 + $0x28] sm:$0xff]  ;;  %v765_v7 = vld [vmem:[%s1598_s7 + $0x18] sm:$0xff] }
  0x19   : > { %1105 = vmatprep.subr.mxu1 %v1254_v1  ;;  %1146 = vmatprep.subr.mxu0 %v1254_v1  ;;  %v766_v6 = vld [vmem:[%s1598_s7 + $0x20] sm:$0xff] }
  0x1a   : > { %1076 = vmatmul.mubr.msk.f32.gmra.mxu0 %vm355_vm2, %v337_v13  ;;  %1106 = vmatpush3.msra.mxu1 %v497_v14  ;;  %v978_v8 = vld [vmem:[%s1595_s4] ss:$0 sm:$0xff] }
  0x1b   : > { %1078 = vmatprep.mubr.msk.f32.mxu0 %vm1255_vm1, %v1254_v1  ;;  %1107 = vmatprep.subr.mxu1 %v1254_v1 }
  0x1c   : > { %1108 = vmatpush3.msra.mxu1 %v496_v15  ;;  %1147 = vmatpush3.msra.mxu0 %v625_v29 }
  0x1d   : > { %1109 = vmatprep.subr.mxu1 %v1254_v1  ;;  %1148 = vmatprep.subr.mxu0 %v1254_v1 }
  0x1e   : > { %1079 = vmatmul.mubr.msk.f32.gmra.mxu0 %vm355_vm2, %v338_v16  ;;  %1110 = vmatpush3.msra.mxu1 %v495_v17 }
  0x1f   : > { %1081 = vmatprep.mubr.msk.f32.mxu0 %vm1255_vm1, %v1254_v1  ;;  %1111 = vmatprep.subr.mxu1 %v1254_v1 }
  0x20   : > { %1112 = vmatpush3.msra.mxu1 %v494_v18  ;;  %1149 = vmatpush3.msra.mxu0 %v624_v30 }
  0x21   : > { %1113 = vmatprep.subr.mxu1 %v1254_v1  ;;  %1150 = vmatprep.subr.mxu0 %v1254_v1 }
  0x22   : > { %1082 = vmatmul.mubr.msk.f32.gmra.mxu0 %vm355_vm2, %v339_v19  ;;  %1114 = vmatpush3.msra.mxu1 %v493_v20 }
  0x23   : > { %1084 = vmatprep.mubr.msk.f32.mxu0 %vm1255_vm1, %v1254_v1  ;;  %1115 = vmatprep.subr.mxu1 %v1254_v1 }
  0x24   : > { %1116 = vmatpush3.msra.mxu1 %v492_v21  ;;  %1151 = vmatpush3.msra.mxu0 %v623_v31 }
  0x25   : > { %1117 = vmatprep.subr.mxu1 %v1254_v1  ;;  %1152 = vmatprep.subr.mxu0 %v1254_v1 }
  0x26   : > { %1085 = vmatmul.mubr.msk.f32.gmra.mxu0 %vm355_vm2, %v340_v22  ;;  %1118 = vmatpush3.msra.mxu1 %v491_v23 }
  0x27   : > { %1087 = vmatprep.mubr.msk.f32.mxu0 %vm1255_vm1, %v1254_v1  ;;  %1119 = vmatprep.subr.mxu1 %v1254_v1 }
  0x28   : > { %1120 = vmatpush3.msra.mxu1 %v490_v26  ;;  %1153 = vmatpush3.msra.mxu0 %v622_v32 }
  0x29   : > { %1121 = vmatprep.subr.mxu1 %v1254_v1  ;;  %1154 = vmatprep.subr.mxu0 %v1254_v1 }
  0x2a   : > { %1088 = vmatmul.mubr.msk.f32.gmra.mxu0 %vm355_vm2, %v341_v24  ;;  %1122 = vmatpush3.msra.mxu1 %v489_v27 }
  0x2b   : > { %1090 = vmatprep.mubr.msk.f32.mxu0 %vm1255_vm1, %v1254_v1  ;;  %1123 = vmatprep.subr.mxu1 %v1254_v1 }
  0x2c   : > { %1124 = vmatpush3.msra.mxu1 %v488_v28  ;;  %1155 = vmatpush3.msra.mxu0 %v621_v33 }
  0x2d   : > { %1220 = vmatprep.subr.mxu1 %v1254_v1  ;;  %1156 = vmatprep.subr.mxu0 %v1254_v1 }
  0x2e   : > { %1091 = vmatmul.mubr.msk.f32.gmra.mxu0 %vm355_vm2, %v342_v25 }
  0x2f   : > { %1162 = vmatprep.mubr.msk.f32.mxu0 %vm1255_vm1, %v1254_v1  ;;  %1157 = vmatpush3.msra.mxu0 %v620_v34 }
  0x30   : > { %1158 = vmatprep.subr.mxu0 %v1254_v1 }
  0x31   : > { %1159 = vmatpush3.msra.mxu0 %v619_v35 }
  0x32   : > { %1160 = vmatprep.subr.mxu0 %v1254_v1 }
  0x33   : > { %1161 = vmatpush3.msra.mxu0 %v618_v2 }
  0x34   : > { %1183 = vmatprep.subr.mxu0 %v1254_v1 }
  0xd6   : > { %v447_v37 = vpop.f32.mrf.mxu0 }
  0xd7   : > { %v448_v38 = vadd.f32 %v969_v36, %v447_v37  ;;  %v764_v37 = vld [vmem:[%s1598_s7 + $0x10] sm:$0xff] }
  0xd8   : > { %v1074_v39 = vpop.f32.mrf.mxu0 }
  0xd9   : > { %v481_v40 = vmax.f32 %v448_v38, 0.0  ;;  %v763_v38 = vld [vmem:[%s1598_s7 + $0x8] sm:$0xff]  ;;  %v762_v39 = vld [vmem:[%s1598_s7] sm:$0xff] }
  0xda   : > { %v452_v41 = vpop.f32.mrf.mxu0 }
  0xdb   : > { %v453_v42 = vadd.f32 %v969_v36, %v452_v41  ;;  %1126 = vmatmul.mubr.f32.vlgmr.msra.gmra.mxu1 %v481_v40  ;;  %v979_v40 = vld [vmem:[%s1597_s6] ss:$0 sm:$0xff] }
  0xdc   : > { %v1077_v43 = vpop.f32.mrf.mxu0  ;;  %1128 = vmatprep.mubr.msk.f32.mxu1 %vm1255_vm1, %v1254_v1  ;;  %1228 = vmatpush3.msra.mxu1 %v769_v3 }
  0xdd   : > { %v482_v44 = vmax.f32 %v453_v42, 0.0  ;;  %1221 = vmatprep.subr.mxu1 %v1254_v1 }
  0xde   : > { %v457_v45 = vpop.f32.mrf.mxu0  ;;  %1229 = vmatpush3.msra.mxu1 %v768_v4 }
  0xdf   : > { %v458_v46 = vadd.f32 %v969_v36, %v457_v45  ;;  %1129 = vmatmul.mubr.f32.gmra.mxu1 %v482_v44  ;;  %1222 = vmatprep.subr.mxu1 %v1254_v1 }
  0xe0   : > { %v1080_v47 = vpop.f32.mrf.mxu0  ;;  %1131 = vmatprep.mubr.msk.f32.mxu1 %vm1255_vm1, %v1254_v1  ;;  %1230 = vmatpush3.msra.mxu1 %v767_v5 }
  0xe1   : > { %v483_v48 = vmax.f32 %v458_v46, 0.0  ;;  %1223 = vmatprep.subr.mxu1 %v1254_v1 }
  0xe2   : > { %v462_v49 = vpop.f32.mrf.mxu0  ;;  %1231 = vmatpush3.msra.mxu1 %v766_v6 }
  0xe3   : > { %v463_v50 = vadd.f32 %v969_v36, %v462_v49  ;;  %1132 = vmatmul.mubr.f32.gmra.mxu1 %v483_v48  ;;  %1224 = vmatprep.subr.mxu1 %v1254_v1 }
  0xe4   : > { %v1083_v51 = vpop.f32.mrf.mxu0  ;;  %1134 = vmatprep.mubr.msk.f32.mxu1 %vm1255_vm1, %v1254_v1  ;;  %1232 = vmatpush3.msra.mxu1 %v765_v7 }
  0xe5   : > { %v484_v52 = vmax.f32 %v463_v50, 0.0  ;;  %1225 = vmatprep.subr.mxu1 %v1254_v1 }
  0xe6   : > { %v467_v53 = vpop.f32.mrf.mxu0  ;;  %1233 = vmatpush3.msra.mxu1 %v764_v37 }
  0xe7   : > { %v468_v54 = vadd.f32 %v969_v36, %v467_v53  ;;  %1135 = vmatmul.mubr.f32.gmra.mxu1 %v484_v52  ;;  %1226 = vmatprep.subr.mxu1 %v1254_v1 }
  0xe8   : > { %v1086_v55 = vpop.f32.mrf.mxu0  ;;  %1137 = vmatprep.mubr.msk.f32.mxu1 %vm1255_vm1, %v1254_v1  ;;  %1234 = vmatpush3.msra.mxu1 %v763_v38 }
  0xe9   : > { %v485_v56 = vmax.f32 %v468_v54, 0.0  ;;  %1227 = vmatprep.subr.mxu1 %v1254_v1 }
  0xea   : > { %v472_v57 = vpop.f32.mrf.mxu0  ;;  %1235 = vmatpush3.msra.mxu1 %v762_v39 }
  0xeb   : > { %v473_v58 = vadd.f32 %v969_v36, %v472_v57  ;;  %1138 = vmatmul.mubr.f32.gmra.mxu1 %v485_v56 }
  0xec   : > { %v1089_v59 = vpop.f32.mrf.mxu0  ;;  %1140 = vmatprep.mubr.msk.f32.mxu1 %vm1255_vm1, %v1254_v1 }
  0xed   : > { %v486_v60 = vmax.f32 %v473_v58, 0.0 }
  0xee   : > { %v477_v61 = vpop.f32.mrf.mxu0 }
  0xef   : > { %v478_v62 = vadd.f32 %v969_v36, %v477_v61  ;;  %1141 = vmatmul.mubr.f32.gmra.mxu1 %v486_v60 }
  0xf0   : > { %v1092_v63 = vpop.f32.mrf.mxu0  ;;  %1143 = vmatprep.mubr.msk.f32.mxu1 %vm1255_vm1, %v1254_v1 }
  0xf1   : > { %v487_v0 = vmax.f32 %v478_v62, 0.0 }
  0xf3   : > { %1144 = vmatmul.mubr.f32.gmra.mxu1 %v487_v0 }
  0xf4   : > { %1205 = vmatprep.mubr.msk.f32.mxu1 %vm1255_vm1, %v1254_v1 }
 0x19b   : > { %v577_v9 = vpop.f32.mrf.mxu1 }
 0x19c   : > { %v578_v10 = vadd.f32 %v978_v8, %v577_v9 }
 0x19d   : > { %v1127_v11 = vpop.f32.mrf.mxu1 }
 0x19e   : > { %v611_v12 = vmax.f32 %v578_v10, 0.0 }
 0x19f   : > { %v582_v13 = vpop.f32.mrf.mxu1 }
 0x1a0   : > { %v583_v14 = vadd.f32 %v978_v8, %v582_v13  ;;  %1163 = vmatmul.mubr.msk.f32.vlgmr.msra.gmra.mxu0 %vm633_vm3, %v611_v12 }
 0x1a1   : > { %v1130_v15 = vpop.f32.mrf.mxu1  ;;  %1165 = vmatprep.mubr.msk.f32.mxu0 %vm1255_vm1, %v1254_v1  ;;  %1184 = vmatpush3.msra.mxu0 %v769_v3 }
 0x1a2   : > { %v612_v16 = vmax.f32 %v583_v14, 0.0  ;;  %1185 = vmatprep.subr.mxu0 %v1254_v1 }
 0x1a3   : > { %v587_v17 = vpop.f32.mrf.mxu1  ;;  %1186 = vmatpush3.msra.mxu0 %v768_v4 }
 0x1a4   : > { %v588_v18 = vadd.f32 %v978_v8, %v587_v17  ;;  %1166 = vmatmul.mubr.msk.f32.gmra.mxu0 %vm633_vm3, %v612_v16  ;;  %1187 = vmatprep.subr.mxu0 %v1254_v1 }
 0x1a5   : > { %v1133_v19 = vpop.f32.mrf.mxu1  ;;  %1168 = vmatprep.mubr.msk.f32.mxu0 %vm1255_vm1, %v1254_v1  ;;  %1188 = vmatpush3.msra.mxu0 %v767_v5 }
 0x1a6   : > { %v613_v20 = vmax.f32 %v588_v18, 0.0  ;;  %1189 = vmatprep.subr.mxu0 %v1254_v1 }
 0x1a7   : > { %v592_v21 = vpop.f32.mrf.mxu1  ;;  %1190 = vmatpush3.msra.mxu0 %v766_v6  ;;  %v987_v6 = vld [vmem:[%s1599_s8] ss:$0 sm:$0xff] }
 0x1a8   : > { %v593_v22 = vadd.f32 %v978_v8, %v592_v21  ;;  %1169 = vmatmul.mubr.msk.f32.gmra.mxu0 %vm633_vm3, %v613_v20  ;;  %1191 = vmatprep.subr.mxu0 %v1254_v1 }
 0x1a9   : > { %v1136_v23 = vpop.f32.mrf.mxu1  ;;  %1171 = vmatprep.mubr.msk.f32.mxu0 %vm1255_vm1, %v1254_v1  ;;  %1192 = vmatpush3.msra.mxu0 %v765_v7 }
 0x1aa   : > { %v614_v24 = vmax.f32 %v593_v22, 0.0  ;;  %1193 = vmatprep.subr.mxu0 %v1254_v1 }
 0x1ab   : > { %v597_v25 = vpop.f32.mrf.mxu1  ;;  %1194 = vmatpush3.msra.mxu0 %v764_v37 }
 0x1ac   : > { %v598_v26 = vadd.f32 %v978_v8, %v597_v25  ;;  %1172 = vmatmul.mubr.msk.f32.gmra.mxu0 %vm633_vm3, %v614_v24  ;;  %1195 = vmatprep.subr.mxu0 %v1254_v1 }
 0x1ad   : > { %v1139_v27 = vpop.f32.mrf.mxu1  ;;  %1174 = vmatprep.mubr.msk.f32.mxu0 %vm1255_vm1, %v1254_v1  ;;  %1196 = vmatpush3.msra.mxu0 %v763_v38 }
 0x1ae   : > { %v615_v28 = vmax.f32 %v598_v26, 0.0  ;;  %1197 = vmatprep.subr.mxu0 %v1254_v1 }
 0x1af   : > { %v602_v29 = vpop.f32.mrf.mxu1  ;;  %1198 = vmatpush3.msra.mxu0 %v762_v39 }
 0x1b0   : > { %v603_v30 = vadd.f32 %v978_v8, %v602_v29  ;;  %1175 = vmatmul.mubr.msk.f32.gmra.mxu0 %vm633_vm3, %v615_v28 }
 0x1b1   : > { %v1142_v31 = vpop.f32.mrf.mxu1  ;;  %1177 = vmatprep.mubr.msk.f32.mxu0 %vm1255_vm1, %v1254_v1 }
 0x1b2   : > { %v616_v32 = vmax.f32 %v603_v30, 0.0 }
 0x1b3   : > { %v607_v33 = vpop.f32.mrf.mxu1 }
 0x1b4   : > { %v608_v34 = vadd.f32 %v978_v8, %v607_v33  ;;  %1178 = vmatmul.mubr.msk.f32.gmra.mxu0 %vm633_vm3, %v616_v32 }
 0x1b5   : > { %v1145_v35 = vpop.f32.mrf.mxu1  ;;  %1180 = vmatprep.mubr.msk.f32.mxu0 %vm1255_vm1, %v1254_v1 }
 0x1b6   : > { %v617_v36 = vmax.f32 %v608_v34, 0.0 }
 0x1b8   : > { %1181 = vmatmul.mubr.msk.f32.gmra.mxu0 %vm633_vm3, %v617_v36 }
 0x1b9   : > { %1199 = vmatprep.mubr.msk.f32.mxu0 %vm1255_vm1, %v1254_v1 }
 0x260   : > { %v721_v41 = vpop.f32.mrf.mxu0 }
 0x261   : > { %v722_v42 = vadd.f32 %v979_v40, %v721_v41 }
 0x262   : > { %v1164_v43 = vpop.f32.mrf.mxu0 }
 0x263   : > { %v755_v44 = vmax.f32 %v722_v42, 0.0 }
 0x264   : > { %v726_v45 = vpop.f32.mrf.mxu0 }
 0x265   : > { %v727_v46 = vadd.f32 %v979_v40, %v726_v45  ;;  %1200 = vmatmul.mubr.msk.f32.vlgmr.msra.gmra.mxu0 %vm633_vm3, %v755_v44 }
 0x266   : > { %v1167_v47 = vpop.f32.mrf.mxu0  ;;  %1202 = vmatprep.mubr.msk.f32.mxu0 %vm1255_vm1, %v1254_v1 }
 0x267   : > { %v756_v48 = vmax.f32 %v727_v46, 0.0 }
 0x268   : > { %v731_v49 = vpop.f32.mrf.mxu0 }
 0x269   : > { %v732_v50 = vadd.f32 %v979_v40, %v731_v49  ;;  %1203 = vmatmul.mubr.msk.f32.gmra.mxu0 %vm633_vm3, %v756_v48 }
 0x26a   : > { %v1170_v51 = vpop.f32.mrf.mxu0 }
 0x26b   : > { %v757_v52 = vmax.f32 %v732_v50, 0.0 }
 0x26c   : > { %v736_v53 = vpop.f32.mrf.mxu0 }
 0x26d   : > { %v737_v54 = vadd.f32 %v979_v40, %v736_v53  ;;  %1206 = vmatmul.mubr.msk.f32.vlgmr.msra.gmra.mxu1 %vm633_vm3, %v757_v52 }
 0x26e   : > { %v1173_v55 = vpop.f32.mrf.mxu0  ;;  %1208 = vmatprep.mubr.msk.f32.mxu1 %vm1255_vm1, %v1254_v1 }
 0x26f   : > { %v758_v56 = vmax.f32 %v737_v54, 0.0 }
 0x270   : > { %v741_v57 = vpop.f32.mrf.mxu0 }
 0x271   : > { %v742_v58 = vadd.f32 %v979_v40, %v741_v57  ;;  %1209 = vmatmul.mubr.msk.f32.gmra.mxu1 %vm633_vm3, %v758_v56 }
 0x272   : > { %v1176_v59 = vpop.f32.mrf.mxu0  ;;  %1211 = vmatprep.mubr.msk.f32.mxu1 %vm1255_vm1, %v1254_v1 }
 0x273   : > { %v759_v60 = vmax.f32 %v742_v58, 0.0 }
 0x274   : > { %v746_v61 = vpop.f32.mrf.mxu0 }
 0x275   : > { %v747_v62 = vadd.f32 %v979_v40, %v746_v61  ;;  %1212 = vmatmul.mubr.msk.f32.gmra.mxu1 %vm633_vm3, %v759_v60 }
 0x276   : > { %v1179_v63 = vpop.f32.mrf.mxu0  ;;  %1214 = vmatprep.mubr.msk.f32.mxu1 %vm1255_vm1, %v1254_v1 }
 0x277   : > { %v760_v0 = vmax.f32 %v747_v62, 0.0 }
 0x278   : > { %v751_v2 = vpop.f32.mrf.mxu0 }
 0x279   : > { %v752_v3 = vadd.f32 %v979_v40, %v751_v2  ;;  %1215 = vmatmul.mubr.msk.f32.gmra.mxu1 %vm633_vm3, %v760_v0 }
 0x27a   : > { %v1182_v4 = vpop.f32.mrf.mxu0  ;;  %1217 = vmatprep.mubr.msk.f32.mxu1 %vm1255_vm1, %v1254_v1 }
 0x27b   : > { %v761_v5 = vmax.f32 %v752_v3, 0.0 }
 0x27d   : > { %1218 = vmatmul.mubr.msk.f32.gmra.mxu1 %vm633_vm3, %v761_v5 }
 0x325   : > { %v864_v7 = vpop.f32.mrf.mxu0 }
 0x326   : > { %v865_v8 = vadd.f32 %v987_v6, %v864_v7 }
 0x327   : > { %v1201_v9 = vpop.f32.mrf.mxu0 }
 0x328   : > { %899 = vst.msk [vmem:[%s334_s27] sm:$0xff] %vm898_vm4, %v865_v8 }
 0x329   : > { %v869_v10 = vpop.f32.mrf.mxu0 }
 0x32a   : > { %v870_v1 = vadd.f32 %v987_v6, %v869_v10 }
 0x32b   : > { %v1204_v11 = vpop.f32.mrf.mxu0 }
 0x32c   : > { %900 = vst.msk [vmem:[%s334_s27 + $0x8] sm:$0xff] %vm898_vm4, %v870_v1 }
 0x32d   : > { %v874_v12 = vpop.f32.mrf.mxu1 }
 0x32e   : > { %v875_v13 = vadd.f32 %v987_v6, %v874_v12 }
 0x32f   : > { %v1207_v14 = vpop.f32.mrf.mxu1 }
 0x330   : > { %901 = vst.msk [vmem:[%s334_s27 + $0x10] sm:$0xff] %vm898_vm4, %v875_v13 }
 0x331   : > { %v879_v15 = vpop.f32.mrf.mxu1 }
 0x332   : > { %v880_v16 = vadd.f32 %v987_v6, %v879_v15 }
 0x333   : > { %v1210_v17 = vpop.f32.mrf.mxu1 }
 0x334   : > { %902 = vst.msk [vmem:[%s334_s27 + $0x18] sm:$0xff] %vm898_vm4, %v880_v16 }
 0x335   : > { %v884_v18 = vpop.f32.mrf.mxu1 }
 0x336   : > { %v885_v19 = vadd.f32 %v987_v6, %v884_v18 }
 0x337   : > { %v1213_v20 = vpop.f32.mrf.mxu1 }
 0x338   : > { %903 = vst.msk [vmem:[%s334_s27 + $0x20] sm:$0xff] %vm898_vm4, %v885_v19 }
 0x339   : > { %v889_v21 = vpop.f32.mrf.mxu1 }
 0x33a   : > { %v890_v22 = vadd.f32 %v987_v6, %v889_v21 }
 0x33b   : > { %v1216_v23 = vpop.f32.mrf.mxu1 }
 0x33c   : > { %904 = vst.msk [vmem:[%s334_s27 + $0x28] sm:$0xff] %vm898_vm4, %v890_v22 }
 0x33d   : > { %v894_v24 = vpop.f32.mrf.mxu1 }
 0x33e   : > { %v895_v25 = vadd.f32 %v987_v6, %v894_v24 }
 0x33f   : > { %v1219_v26 = vpop.f32.mrf.mxu1 }
 0x340   : > { %905 = vst.msk [vmem:[%s334_s27 + $0x30] sm:$0xff] %vm898_vm4, %v895_v25 }
 0x341 PF: > { %s19_s30 = sadd.s32 1, %s1252_s30  }
 0x342   : > { %p16_p4 = scmp.ge.s32.totalorder %s19_s30, 4  }
 0x344   :  { %18 = sbr.rel (!%p16_p4) target bundleno = 1 (0x1), region = 86 }

</bundles_post_ra>
